<compile_context>
chip_gen: v6e
topology: v6e:2x2x1
jax: 0.10.0
libtpu: 0.0.40
codegen_flags: <defaults>
</compile_context>

<pallas_src>
import math

import jax
import jax.numpy as jnp
import numpy as np
from jax.experimental import pallas as pl
from jax.experimental.pallas import tpu as pltpu


# ----------------------------- config (synthetic) ---------------------------
B = 2            # batch
S = 8            # sequence length
D_MODEL = 32     # d_model
N_HEADS = 4      # num_heads (model-parallel world size == 1)
D_KV = 8         # d_kv
INNER = N_HEADS * D_KV  # 32
NUM_BUCKETS = 32
MAX_DISTANCE = 128
IS_DECODER = False       # encoder -> bidirectional buckets
# dropout_rate: nn.Dropout in eval mode is identity, so it is omitted here.
# TODO(synk): training-mode dropout on attn_weights is not implemented.
# TODO(synk): decoder use_cache KV-cache path and Column/RowParallelLinear
#             model-parallel collectives are not implemented (world size 1).
# TODO(synk): at production S, form the relative-position bias per tile
#             in-kernel from the (NUM_BUCKETS, H) table instead of passing
#             the (H, S, S) slab.


# ----------------------- relative position bias (JAX glue) ------------------
def _relative_position_bucket(rel_pos, bidirectional=True, num_buckets=32,
                              max_distance=128):
    relative_buckets = jnp.zeros_like(rel_pos)
    n = rel_pos
    if bidirectional:
        num_buckets //= 2
        relative_buckets = relative_buckets + (n > 0).astype(jnp.int32) * num_buckets
        n = jnp.abs(n)
    else:
        n = -jnp.minimum(n, jnp.zeros_like(n))
    max_exact = num_buckets // 2
    is_small = n < max_exact
    # guard log(0): the value is only used where is_small == False
    safe_n = jnp.maximum(n, 1)
    val_if_large = max_exact + (
        jnp.log(safe_n.astype(jnp.float32) / max_exact)
        / math.log(max_distance / max_exact)
        * (num_buckets - max_exact)
    ).astype(jnp.int32)
    val_if_large = jnp.minimum(val_if_large, num_buckets - 1)
    relative_buckets = relative_buckets + jnp.where(is_small, n, val_if_large)
    return relative_buckets


def compute_relative_position_bias(query_length, key_length, bidirectional,
                                   emb_table, num_buckets=32, max_distance=128):
    context_position = jnp.arange(query_length, dtype=jnp.int32)[:, None]
    memory_position = jnp.arange(key_length, dtype=jnp.int32)[None, :]
    relative_position = memory_position - context_position          # (Sq, Sk)
    buckets = _relative_position_bucket(
        relative_position, bidirectional, num_buckets, max_distance)
    values = emb_table[buckets]                                      # (Sq, Sk, H)
    values = jnp.transpose(values, (2, 0, 1))                        # (H, Sq, Sk)
    return values


# ------------------------------- Pallas kernel -------------------------------
def _make_kernel(seq, n_heads, d_kv, inner):
    def kernel(h_ref, wqkv_ref, wo_ref, bias_ref, mask_ref, out_ref):
        # h_ref:    (1, S, D)      bf16 hidden states for this batch element
        # wqkv_ref: (D, 3*inner)   bf16 fused [Wq | Wk | Wv]   (grid-constant)
        # wo_ref:   (inner, D)     bf16 output projection      (grid-constant)
        # bias_ref: (H, S, S)      f32 relative-position bias  (grid-constant)
        # mask_ref: (1, 1, S)      f32 additive key mask for this batch
        # out_ref:  (1, S, D)      f32
        h = h_ref[0]                                               # (S, D) bf16

        # Fused QKV projection: ONE bf16 MXU matmul, f32 accumulation.
        qkv = jnp.dot(h, wqkv_ref[...],
                      preferred_element_type=jnp.float32)          # (S, 3*inner) f32

        def heads(lo):
            # (S, inner) lane slice -> (S, H, d_kv) -> (H, S, d_kv); the
            # relayout is done in f32, then cast to bf16 for the MXU.
            x = qkv[:, lo:lo + inner].reshape(seq, n_heads, d_kv)
            return jnp.transpose(x, (1, 0, 2)).astype(jnp.bfloat16)

        q = heads(0)
        k = heads(inner)
        v = heads(2 * inner)

        # NOTE: T5 does NOT scale scores by 1/sqrt(d_kv).
        # ONE head-batched dot_general over all heads (leading batch dim).
        scores = jnp.einsum('hqd,hkd->hqk', q, k,
                            preferred_element_type=jnp.float32)    # (H, S, S) f32
        # position bias (H,S,S) + additive attention mask (1,1,S), broadcast.
        scores = scores + bias_ref[...] + mask_ref[...]

        # softmax in float32
        m = jnp.max(scores, axis=-1, keepdims=True)
        e = jnp.exp(scores - m)
        denom = jnp.sum(e, axis=-1, keepdims=True)
        probs = e * pl.reciprocal(denom, approx=True)               # EUP vrcp
        # (eval-mode dropout == identity)

        ctx = jnp.einsum('hqk,hkd->hqd', probs.astype(jnp.bfloat16), v,
                         preferred_element_type=jnp.float32)        # (H, S, d_kv) f32
        ctx = jnp.transpose(ctx, (1, 0, 2)).reshape(seq, inner)     # (S, inner) f32

        out = jnp.dot(ctx.astype(jnp.bfloat16), wo_ref[...],
                      preferred_element_type=jnp.float32)           # (S, D) f32
        out_ref[0] = out.astype(out_ref.dtype)

    return kernel


def t5_attention_pallas(hidden_states, wq, wk, wv, wo, position_bias, attn_mask):
    """hidden_states: (B, S, D) bf16; wq/wk/wv: (D, inner) bf16; wo: (inner, D) bf16;
    position_bias: (H, S, S) f32; attn_mask: (B, 1, S) additive f32."""
    b, s, d = hidden_states.shape
    h = position_bias.shape[0]

    # Wrapper-side layout plumbing (plain JAX, outside the kernel):
    wqkv = jnp.concatenate([wq, wk, wv], axis=1)                 # (D, 3*inner) bf16

    flops = (2 * b * s * d * 3 * INNER          # fused QKV projection
             + 2 * b * h * s * s * D_KV         # QK^T
             + 2 * b * h * s * s * D_KV         # PV
             + 2 * b * s * INNER * d)           # output projection
    bytes_accessed = (hidden_states.size * hidden_states.dtype.itemsize
                      + wqkv.size * wqkv.dtype.itemsize
                      + wo.size * wo.dtype.itemsize
                      + position_bias.size * position_bias.dtype.itemsize
                      + attn_mask.size * attn_mask.dtype.itemsize
                      + b * s * d * 4)          # f32 output
    cost = pl.CostEstimate(flops=flops, transcendentals=b * h * s * s,
                           bytes_accessed=bytes_accessed)

    kernel = _make_kernel(s, h, D_KV, INNER)

    out = pl.pallas_call(
        kernel,
        out_shape=jax.ShapeDtypeStruct((b, s, d), jnp.float32),
        grid_spec=pltpu.PrefetchScalarGridSpec(
            num_scalar_prefetch=0,
            grid=(b,),                                           # batch -> parallel
            in_specs=[
                pl.BlockSpec((1, s, d), lambda i: (i, 0, 0)),            # hidden
                pl.BlockSpec((d, 3 * INNER), lambda i: (0, 0)),          # Wqkv (resident)
                pl.BlockSpec((INNER, d), lambda i: (0, 0)),              # Wo   (resident)
                pl.BlockSpec((h, s, s), lambda i: (0, 0, 0)),            # pos bias (resident)
                pl.BlockSpec((1, 1, s), lambda i: (i, 0, 0)),            # additive mask
            ],
            out_specs=pl.BlockSpec((1, s, d), lambda i: (i, 0, 0)),
        ),
        compiler_params=pltpu.CompilerParams(
            dimension_semantics=("parallel",),
            vmem_limit_bytes=32 * 1024 * 1024),
        cost_estimate=cost,
    )(hidden_states, wqkv, wo, position_bias, attn_mask)
    return out


# ----------------------------- pure-JAX reference ----------------------------
def t5_attention_ref(hidden_states, wq, wk, wv, wo, position_bias, attn_mask):
    """Exact float32 forward from the (bf16-rounded) parameters."""
    h32 = hidden_states.astype(jnp.float32)
    wq32, wk32, wv32, wo32 = (w.astype(jnp.float32) for w in (wq, wk, wv, wo))
    q = h32 @ wq32
    k = h32 @ wk32
    v = h32 @ wv32

    def split(x):  # (B, S, H*Dk) -> (B, H, S, Dk)
        bb, ss, _ = x.shape
        return jnp.transpose(x.reshape(bb, ss, N_HEADS, D_KV), (0, 2, 1, 3))

    qh, kh, vh = split(q), split(k), split(v)
    bias = position_bias[None] + attn_mask[:, None]              # (B, H, S, S)
    scores = jnp.einsum("bhqd,bhkd->bhqk", qh, kh) + bias
    probs = jax.nn.softmax(scores, axis=-1)
    ctx = jnp.einsum("bhqk,bhkd->bhqd", probs, vh)
    ctx = jnp.transpose(ctx, (0, 2, 1, 3)).reshape(hidden_states.shape[0], -1, INNER)
    return ctx @ wo32


# ------------------------------------ main ------------------------------------
if __name__ == "__main__":
    key = jax.random.PRNGKey(0)
    k_h, k_q, k_k, k_v, k_o, k_e = jax.random.split(key, 6)

    # deterministic parameter init (synthetic; no checkpoint load), cast to bf16
    # once so kernel and reference consume identical (bf16-representable) inputs.
    hidden_states = jax.random.normal(
        k_h, (B, S, D_MODEL), dtype=jnp.float32).astype(jnp.bfloat16)
    sc_in = 1.0 / math.sqrt(D_MODEL)
    wq = (jax.random.normal(k_q, (D_MODEL, INNER), jnp.float32) * sc_in).astype(jnp.bfloat16)
    wk = (jax.random.normal(k_k, (D_MODEL, INNER), jnp.float32) * sc_in).astype(jnp.bfloat16)
    wv = (jax.random.normal(k_v, (D_MODEL, INNER), jnp.float32) * sc_in).astype(jnp.bfloat16)
    wo = (jax.random.normal(k_o, (INNER, D_MODEL), jnp.float32)
          * (1.0 / math.sqrt(INNER))).astype(jnp.bfloat16)
    rel_emb = jax.random.normal(k_e, (NUM_BUCKETS, N_HEADS), dtype=jnp.float32) * 0.5

    # position_bias = None path: relative position bias (encoder -> bidirectional)
    position_bias = compute_relative_position_bias(
        S, S, bidirectional=not IS_DECODER, emb_table=rel_emb,
        num_buckets=NUM_BUCKETS, max_distance=MAX_DISTANCE)          # (H, S, S) f32

    # additive attention mask (T5-style extended mask): mask out last 2 keys of batch 1
    valid = jnp.ones((B, S), dtype=jnp.float32).at[1, S - 2:].set(0.0)
    attn_mask = ((1.0 - valid) * (-1e9))[:, None, :]                 # (B, 1, S) additive

    out = t5_attention_pallas(hidden_states, wq, wk, wv, wo, position_bias, attn_mask)
    out = jax.block_until_ready(out)

    ref = t5_attention_ref(hidden_states, wq, wk, wv, wo, position_bias, attn_mask)
    # Tolerance accounts for bf16 MXU operands (per performance review) plus the
    # EUP approximate reciprocal in the softmax denominator; a structural bug
    # (wrong head slicing, missing bias/mask) produces O(0.3+) errors.
    np.testing.assert_allclose(np.asarray(out), np.asarray(ref), rtol=5e-2, atol=8e-2)

    print("KERNEL_OK")
</pallas_src>

<mosaic_0001>
module attributes {stable_mosaic.version = 11 : i64} {
  func.func @kernel(%arg0: i32, %arg1: memref<1x8x32xbf16, #tpu.memory_space<vmem>>, %arg2: memref<32x96xbf16, #tpu.memory_space<vmem>>, %arg3: memref<32x32xbf16, #tpu.memory_space<vmem>>, %arg4: memref<4x8x8xf32, #tpu.memory_space<vmem>>, %arg5: memref<1x1x8xf32, #tpu.memory_space<vmem>>, %arg6: memref<1x8x32xf32, #tpu.memory_space<vmem>>) attributes {dimension_semantics = [#tpu.dimension_semantics<parallel>], iteration_bounds = array<i64: 2>, scalar_prefetch = 0 : i64, scratch_operands = 0 : i64, tpu.core_type = #tpu.core_type<tc>, window_params = [{transform_indices = @transform_0, window_bounds = array<i64: 1, 8, 32>}, {pipeline_mode = #tpu.pipeline_mode<synchronous>, transform_indices = @transform_1, window_bounds = array<i64: 32, 96>}, {pipeline_mode = #tpu.pipeline_mode<synchronous>, transform_indices = @transform_2, window_bounds = array<i64: 32, 32>}, {pipeline_mode = #tpu.pipeline_mode<synchronous>, transform_indices = @transform_3, window_bounds = array<i64: 4, 8, 8>}, {transform_indices = @transform_4, window_bounds = array<i64: 1, 1, 8>}, {transform_indices = @transform_5, window_bounds = array<i64: 1, 8, 32>}]} {
    %c0 = arith.constant 0 : index
    %c0_0 = arith.constant 0 : index
    %c0_1 = arith.constant 0 : index
    %0 = vector.load %arg1[%c0, %c0_0, %c0_1] : memref<1x8x32xbf16, #tpu.memory_space<vmem>>, vector<1x8x32xbf16>
    %1 = vector.shape_cast %0 : vector<1x8x32xbf16> to vector<8x32xbf16>
    %c0_2 = arith.constant 0 : index
    %c0_3 = arith.constant 0 : index
    %2 = vector.load %arg2[%c0_2, %c0_3] : memref<32x96xbf16, #tpu.memory_space<vmem>>, vector<32x96xbf16>
    %cst = arith.constant dense<0.000000e+00> : vector<8x96xf32>
    %3 = tpu.matmul %1, %2, %cst {dimension_numbers = #tpu.dot_dimension_numbers<[1], [0], [0], [1], [0, 0, 1, 1], [], []>} : vector<8x32xbf16>, vector<32x96xbf16>, vector<8x96xf32> -> vector<8x96xf32>
    %4 = vector.extract_strided_slice %3 {offsets = [0, 0], sizes = [8, 32], strides = [1, 1]} : vector<8x96xf32> to vector<8x32xf32>
    %5 = vector.shape_cast %4 : vector<8x32xf32> to vector<8x4x8xf32>
    %6 = tpu.transpose %5, [1, 0, 2] : vector<8x4x8xf32> -> vector<4x8x8xf32>
    %7 = arith.truncf %6 : vector<4x8x8xf32> to vector<4x8x8xbf16>
    %8 = vector.extract_strided_slice %3 {offsets = [0, 32], sizes = [8, 32], strides = [1, 1]} : vector<8x96xf32> to vector<8x32xf32>
    %9 = vector.shape_cast %8 : vector<8x32xf32> to vector<8x4x8xf32>
    %10 = tpu.transpose %9, [1, 0, 2] : vector<8x4x8xf32> -> vector<4x8x8xf32>
    %11 = arith.truncf %10 : vector<4x8x8xf32> to vector<4x8x8xbf16>
    %12 = vector.extract_strided_slice %3 {offsets = [0, 64], sizes = [8, 32], strides = [1, 1]} : vector<8x96xf32> to vector<8x32xf32>
    %13 = vector.shape_cast %12 : vector<8x32xf32> to vector<8x4x8xf32>
    %14 = tpu.transpose %13, [1, 0, 2] : vector<8x4x8xf32> -> vector<4x8x8xf32>
    %15 = arith.truncf %14 : vector<4x8x8xf32> to vector<4x8x8xbf16>
    "tpu.trace_start"() <{level = 10 : i32, message = "hqd,hkd->hqk"}> : () -> ()
    %cst_4 = arith.constant dense<0.000000e+00> : vector<4x8x8xf32>
    %16 = tpu.matmul %7, %11, %cst_4 {dimension_numbers = #tpu.dot_dimension_numbers<[2], [2], [1], [1], [0, 0, 0, 1, 1, 1], [0], [0]>} : vector<4x8x8xbf16>, vector<4x8x8xbf16>, vector<4x8x8xf32> -> vector<4x8x8xf32>
    "tpu.trace_stop"() : () -> ()
    %c0_5 = arith.constant 0 : index
    %c0_6 = arith.constant 0 : index
    %c0_7 = arith.constant 0 : index
    %17 = vector.load %arg4[%c0_5, %c0_6, %c0_7] : memref<4x8x8xf32, #tpu.memory_space<vmem>>, vector<4x8x8xf32>
    %18 = arith.addf %16, %17 : vector<4x8x8xf32>
    %c0_8 = arith.constant 0 : index
    %c0_9 = arith.constant 0 : index
    %c0_10 = arith.constant 0 : index
    %19 = vector.load %arg5[%c0_8, %c0_9, %c0_10] : memref<1x1x8xf32, #tpu.memory_space<vmem>>, vector<1x1x8xf32>
    %20 = vector.broadcast %19 : vector<1x1x8xf32> to vector<4x8x8xf32>
    %21 = arith.addf %18, %20 : vector<4x8x8xf32>
    %cst_11 = arith.constant dense<0xFF800000> : vector<4x8xf32>
    %22 = vector.multi_reduction <maximumf>, %21, %cst_11 [2] : vector<4x8x8xf32> to vector<4x8xf32>
    %23 = vector.shape_cast %22 : vector<4x8xf32> to vector<4x8x1xf32>
    %24 = vector.broadcast %23 : vector<4x8x1xf32> to vector<4x8x8xf32>
    %25 = arith.subf %21, %24 : vector<4x8x8xf32>
    %26 = math.exp %25 : vector<4x8x8xf32>
    %cst_12 = arith.constant dense<0.000000e+00> : vector<4x8xf32>
    %27 = vector.multi_reduction <add>, %26, %cst_12 [2] : vector<4x8x8xf32> to vector<4x8xf32>
    %28 = vector.shape_cast %27 : vector<4x8xf32> to vector<4x8x1xf32>
    %29 = tpu.reciprocal %28 {approx = true} : vector<4x8x1xf32> -> vector<4x8x1xf32>
    %30 = vector.broadcast %29 : vector<4x8x1xf32> to vector<4x8x8xf32>
    %31 = arith.mulf %26, %30 : vector<4x8x8xf32>
    %32 = arith.truncf %31 : vector<4x8x8xf32> to vector<4x8x8xbf16>
    "tpu.trace_start"() <{level = 10 : i32, message = "hqk,hkd->hqd"}> : () -> ()
    %cst_13 = arith.constant dense<0.000000e+00> : vector<4x8x8xf32>
    %33 = tpu.matmul %32, %15, %cst_13 {dimension_numbers = #tpu.dot_dimension_numbers<[2], [1], [1], [2], [0, 0, 0, 1, 1, 2], [0], [0]>} : vector<4x8x8xbf16>, vector<4x8x8xbf16>, vector<4x8x8xf32> -> vector<4x8x8xf32>
    "tpu.trace_stop"() : () -> ()
    %34 = tpu.transpose %33, [1, 0, 2] : vector<4x8x8xf32> -> vector<8x4x8xf32>
    %35 = vector.shape_cast %34 : vector<8x4x8xf32> to vector<8x32xf32>
    %36 = arith.truncf %35 : vector<8x32xf32> to vector<8x32xbf16>
    %c0_14 = arith.constant 0 : index
    %c0_15 = arith.constant 0 : index
    %37 = vector.load %arg3[%c0_14, %c0_15] : memref<32x32xbf16, #tpu.memory_space<vmem>>, vector<32x32xbf16>
    %cst_16 = arith.constant dense<0.000000e+00> : vector<8x32xf32>
    %38 = tpu.matmul %36, %37, %cst_16 {dimension_numbers = #tpu.dot_dimension_numbers<[1], [0], [0], [1], [0, 0, 1, 1], [], []>} : vector<8x32xbf16>, vector<32x32xbf16>, vector<8x32xf32> -> vector<8x32xf32>
    %c0_17 = arith.constant 0 : index
    %c0_18 = arith.constant 0 : index
    %c0_19 = arith.constant 0 : index
    %39 = vector.load %arg6[%c0_17, %c0_18, %c0_19] : memref<1x8x32xf32, #tpu.memory_space<vmem>>, vector<1x8x32xf32>
    %40 = vector.shape_cast %39 : vector<1x8x32xf32> to vector<8x32xf32>
    %41 = vector.shape_cast %38 : vector<8x32xf32> to vector<1x8x32xf32>
    tpu.vector_store %arg6[%c0_17, %c0_18, %c0_19], %41 {strides = array<i32>} : memref<1x8x32xf32, #tpu.memory_space<vmem>>, vector<1x8x32xf32>,
    return
  }
  func.func @transform_0(%arg0: i32) -> (i32, i32, i32) {
    %c0_i32 = arith.constant 0 : i32
    %c0_i32_0 = arith.constant 0 : i32
    %c0_i32_1 = arith.constant 0 : i32
    return %arg0, %c0_i32, %c0_i32_0 : i32, i32, i32
  }
  func.func @transform_1(%arg0: i32) -> (i32, i32) {
    %c0_i32 = arith.constant 0 : i32
    %c0_i32_0 = arith.constant 0 : i32
    %c0_i32_1 = arith.constant 0 : i32
    return %c0_i32, %c0_i32_0 : i32, i32
  }
  func.func @transform_2(%arg0: i32) -> (i32, i32) {
    %c0_i32 = arith.constant 0 : i32
    %c0_i32_0 = arith.constant 0 : i32
    %c0_i32_1 = arith.constant 0 : i32
    return %c0_i32, %c0_i32_0 : i32, i32
  }
  func.func @transform_3(%arg0: i32) -> (i32, i32, i32) {
    %c0_i32 = arith.constant 0 : i32
    %c0_i32_0 = arith.constant 0 : i32
    %c0_i32_1 = arith.constant 0 : i32
    %c0_i32_2 = arith.constant 0 : i32
    return %c0_i32, %c0_i32_0, %c0_i32_1 : i32, i32, i32
  }
  func.func @transform_4(%arg0: i32) -> (i32, i32, i32) {
    %c0_i32 = arith.constant 0 : i32
    %c0_i32_0 = arith.constant 0 : i32
    %c0_i32_1 = arith.constant 0 : i32
    return %arg0, %c0_i32, %c0_i32_0 : i32, i32, i32
  }
  func.func @transform_5(%arg0: i32) -> (i32, i32, i32) {
    %c0_i32 = arith.constant 0 : i32
    %c0_i32_0 = arith.constant 0 : i32
    %c0_i32_1 = arith.constant 0 : i32
    return %arg0, %c0_i32, %c0_i32_0 : i32, i32, i32
  }
}

</mosaic_0001>

<bundles_post_ra>
// kernel: tpu_custom_call.1
= control target key start
LH: loop header
LB: loop body
LE: loop exit
PB: predicated region body
PF: predicated region fallthrough
CT: control target
= control target key end

     0   :  { %10 = vsyncpa [#allocation3], 0  ;;  %s2420_s0 = inlined_call_operand.hbm [shape: bf16[2,8,32], index: 0, kind: input, shape index: {}]   ;;  %s2421_s1 = inlined_call_operand.hbm [shape: bf16[32,96], index: 1, kind: input, shape index: {}]   ;;  %s2422_s2 = inlined_call_operand.hbm [shape: bf16[32,32], index: 2, kind: input, shape index: {}]   ;;  %s2423_s3 = inlined_call_operand.hbm [shape: f32[4,8,8], index: 3, kind: input, shape index: {}]   ;;  %s2424_s4 = inlined_call_operand.vmem [shape: f32[2,1,8], index: 4, kind: input, shape index: {}]   ;;  %s2425_s5 = inlined_call_operand.hbm [shape: f32[2,8,32], index: 5, kind: output, shape index: {}]  }
   0x1   :  { %12 = vsyncpa [#allocation3 + $0x1], 0 }
   0x2   :  { %13 = vsyncpa [#allocation6], 0 }
   0x3   :  { %14 = vsyncpa [#allocation9], 0 }
   0x4   :  { %15 = vsyncpa [#allocation4], 0 }
   0x5   :  { %17 = vsyncpa [#allocation4 + $0x1], 0  ;;  %s2054_s18 = smov 0   ;;  %s2056_s19 = smov 0  }
   0x6   :  { %s2058_s20 = smov 0   ;;  %s2060_s21 = smov 0  }
   0x7 LB: > { %s2075_s22 = sadd.s32 4294967295, %s2001_s21   ;;  %s1583_s23 = sadd.s32 4294967294, %s2001_s21   ;;  %s2001_s21 = sphi %s2060_s21, %s2449_s21   ;;  %s1997_s20 = sphi %s2058_s20, %s2448_s20   ;;  %s1993_s19 = sphi %s2056_s19, %s2447_s19   ;;  %s1989_s18 = sphi %s2054_s18, %s2446_s18  }
   0x8   : > { %p43_p0 = scmp.ne.s32.totalorder %s1993_s19, %s1989_s18  ;;  %p2426_p1 = scmp.eq.s32.totalorder %s2075_s22, 0 }
   0x9   : > { %p162_p3 = scmp.eq.s32.totalorder %s1583_s23, 1  ;;  %p1584_p5 = scmp.ge.s32.totalorder %s2001_s21, 1 }
   0xa   : > { %p2084_p4 = por %p2426_p1, %p43_p0  ;;  %p169_p7 = scmp.lt.s32.totalorder %s2001_s21, 3 }
   0xb   : > { %p2089_p6 = por %p162_p3, %p43_p0  ;;  %s2003_s27 = smov [#allocation5]  }
   0xc   : > { %s2430_s24 = scalar_select %p2084_p4, 1, 0 }
   0xd   : > { %s2431_s25 = scalar_select %p2089_p6, 1, 0 }
   0xe   : > { %p2094_p8 = pnand %p1584_p5, %p169_p7  ;;  %s181_s28 = sshll.u32 %s2003_s27, 4  ;;  %s182_s28 = int_to_ptr.vmem [resolvable:$true] %s181_s28 }
   0xf   : > { %s2004_s30 = smov [#allocation7]   ;;  %s2005_s7 = smov [#allocation8]  }
  0x10   : > { %s2432_s26 = scalar_select %p2094_p8, 1, 0 }
  0x11   : > { %p1726_p9 = pneg %p2094_p8  ;;  %s194_s6 = sshll.u32 %s2004_s30, 4  ;;  %s195_s6 = int_to_ptr.vmem [resolvable:$true] %s194_s6 }
  0x12   : > { %s207_s8 = sshll.u32 %s2005_s7, 4  ;;  %s1834_s9 = scalar_lea.vmem %s182_s28, 256  ;;  %s208_s8 = int_to_ptr.vmem [resolvable:$true] %s207_s8 }
  0x13   : > { %p2103_p11 = pnand %p1726_p9, %p2426_p1  ;;  %p1835_p13 = scmp.ne.s32.totalorder %s182_s28, %s1834_s9 }
  0x14   : > { %p1842_p5 = scmp.lt.s32.totalorder %s182_s28, %s182_s28  ;;  %p1843_p7 = scmp.lt.s32.totalorder %s1834_s9, %s1834_s9 }
  0x15   : > { %p1825_p12 = pneg %p2103_p11 }
  0x16   : > { %p1844_p9 = por %p1843_p7, %p1842_p5 }
  0x17   : > { %p1837_p0 = pnand %p1835_p13, %p1825_p12 }
  0x19   : > { %p1838_p3 = pneg %p1837_p0 }
  0x1b   : > { %p1845_p10 = pnand %p1844_p9, %p1838_p3 }
  0x1d   : > { %1848 = shalt.err (!%p1845_p10)
}
  0x1e   : > { %s2006_s10 = smov 64   ;;  %s2007_s11 = smov 4  }
  0x1f   : > { %1729 = dma.hbm_to_vmem [thread:$0]  (!%p2103_p11), %s2421_s1, 256, %s182_s28, [#allocation6], %s2006_s10, %s2006_s10, %s2007_s11  }
  0x20   : > { %s1860_s14 = scalar_lea.vmem %s195_s6, 256  ;;  %p1868_p2 = scmp.lt.s32.totalorder %s195_s6, %s195_s6 }
  0x21   : > { %p1861_p1 = scmp.ne.s32.totalorder %s195_s6, %s1860_s14  ;;  %p1869_p6 = scmp.lt.s32.totalorder %s1860_s14, %s1860_s14 }
  0x23   : > { %p1863_p13 = pnand %p1861_p1, %p1825_p12  ;;  %p1870_p5 = por %p1869_p6, %p1868_p2 }
  0x25   : > { %p1864_p0 = pneg %p1863_p13 }
  0x27   : > { %p1871_p3 = pnand %p1870_p5, %p1864_p0 }
  0x29   : > { %1874 = shalt.err (!%p1871_p3)
}
  0x2a   : > { %1732 = dma.hbm_to_vmem [thread:$0]  (!%p2103_p11), %s2422_s2, 256, %s195_s6, [#allocation6], %s2006_s10, %s2006_s10, %s2007_s11  }
  0x2b   : > { %s1886_s17 = scalar_lea.vmem %s208_s8, 512  ;;  %p1894_p9 = scmp.lt.s32.totalorder %s208_s8, %s208_s8 }
  0x2c   : > { %p1887_p10 = scmp.ne.s32.totalorder %s208_s8, %s1886_s17  ;;  %p1895_p13 = scmp.lt.s32.totalorder %s1886_s17, %s1886_s17 }
  0x2e   : > { %p1889_p7 = pnand %p1887_p10, %p1825_p12  ;;  %p1896_p4 = por %p1895_p13, %p1894_p9 }
  0x30   : > { %p1890_p1 = pneg %p1889_p7 }
  0x32   : > { %p1897_p2 = pnand %p1896_p4, %p1890_p1 }
  0x34   : > { %1900 = shalt.err (!%p1897_p2)
}
  0x35   : > { %s2008_s23 = smov 128   ;;  %s2009_s27 = smov 8  }
  0x36   : > { %1735 = dma.hbm_to_vmem [thread:$0]  (!%p2103_p11), %s2423_s3, 512, %s208_s8, [#allocation9], %s2008_s23, %s2008_s23, %s2009_s27  }
  0x37   : > { %s2134_s6 = sadd.s32 1, %s2001_s21   ;;  %s30_s9 = sadd.s32 1, %s1997_s20 }
  0x38   : > { %s27_s7 = ssub.s32 %s2001_s21, %s2134_s6  ;;  %p37_p6 = scmp.ne.s32.totalorder %s1997_s20, %s1993_s19 }
  0x39   : > { %p28_p4 = scmp.eq.s32.totalorder %s27_s7, 0  ;;  %p38_p12 = scmp.eq.s32.totalorder %s2001_s21, 0 }
  0x3a   : > { %p1747_p0 = scmp.lt.s32.totalorder %s2001_s21, 2  ;;  %p2434_p3 = scmp.eq.s32.totalorder %s2075_s22, 1 }
  0x3b   : > { %s2144_s10 = scalar_select %p28_p4, %s1997_s20, %s30_s9  }
  0x3c   : > { %p39_p5 = por %p38_p12, %p37_p6  ;;  %p2148_p10 = por %p2434_p3, %p37_p6 }
  0x3d   : > { %s221_s29 = sand.u32 1, %s1997_s20   ;;  %s1590_s12 = sshll.u32 %s2001_s21, 6 }
  0x3e   : > { %s2435_s11 = scalar_select %p2148_p10, 1, 0 }
  0x3f   : > { %s1589_s8 = sshll.u32 %s221_s29, 2  ;;  %s2157_s15 = scalar_lea.hbm %s2420_s0, %s1590_s12 }
  0x40   : > { %s225_s16 = scalar_lea.vmem [#allocation2], %s1589_s8  ;;  %p2159_p11 = pnand %p1747_p0, %p39_p5 }
  0x41   : > { %s232_s17 = sshll.u32 %s225_s16, 4  ;;  %s222_s27 = scalar_lea.sflag [#allocation3], %s221_s29  ;;  %s233_s17 = int_to_ptr.vmem [resolvable:$true] %s232_s17 }
  0x42   : > { %s1901_s28 = scalar_lea.hbm %s2157_s15, 64  ;;  %p1903_p1 = pneg %p2159_p11 }
  0x43   : > { %p1902_p7 = scmp.ne.s32.totalorder %s2157_s15, %s1901_s28  ;;  %s1906_s9 = scalar_lea.hbm %s2420_s0, 128 }
  0x44   : > { %p1907_p2 = scmp.lt.s32.totalorder %s2157_s15, %s2420_s0  ;;  %p1908_p4 = scmp.lt.s32.totalorder %s1906_s9, %s1901_s28 }
  0x45   : > { %p1904_p9 = pnand %p1903_p1, %p1902_p7 }
  0x46   : > { %p1909_p6 = por %p1908_p4, %p1907_p2 }
  0x47   : > { %p1905_p13 = pneg %p1904_p9 }
  0x49   : > { %p1910_p12 = pnand %p1909_p6, %p1905_p13 }
  0x4b   : > { %1913 = shalt.err (!%p1910_p12)
}
  0x4c   : > { %s1914_s13 = scalar_lea.vmem %s233_s17, 64  ;;  %s2010_s29 = smov [#allocation2]  }
  0x4d   : > { %p1915_p0 = scmp.ne.s32.totalorder %s233_s17, %s1914_s13  ;;  %s1919_s14 = sshll.u32 %s2010_s29, 4  ;;  %s1920_s14 = int_to_ptr.vmem [resolvable:$false] %s1919_s14 }
  0x4e   : > { %s1921_s16 = scalar_lea.vmem %s1920_s14, 128  ;;  %p1922_p7 = scmp.lt.s32.totalorder %s233_s17, %s1920_s14 }
  0x4f   : > { %p1917_p5 = pnand %p1915_p0, %p1903_p1  ;;  %p1923_p9 = scmp.lt.s32.totalorder %s1921_s16, %s1914_s13 }
  0x51   : > { %p1918_p3 = pneg %p1917_p5  ;;  %p1924_p10 = por %p1923_p9, %p1922_p7 }
  0x53   : > { %p1925_p8 = pnand %p1924_p10, %p1918_p3 }
  0x55   : > { %1928 = shalt.err (!%p1925_p8)
}
  0x56   : > { %1739 = dma.hbm_to_vmem [thread:$0]  (!%p2159_p11), %s2157_s15, 64, %s233_s17, %s222_s27  }
  0x57   : > { %p2437_p13 = scmp.ne.s32.totalorder %s2432_s26, 0 }
  0x58   : > { %s2180_s28 = sand.u32 (!%p2437_p13), 1, %s1993_s19   ;;  %p2438_p1 = scmp.ne.s32.totalorder (!%p2437_p13), %s2430_s24, 0 }
  0x59   : > { %247 = sbr.rel (%p2437_p13) target bundleno = 1673 (0x689), region = 40  ;;  %s1592_s30 = sshll.u32 (!%p2437_p13), %s2180_s28, 2 }
  0x5a   : > { %s250_s7 = scalar_lea.sflag (!%p2437_p13), [#allocation3], %s2180_s28  ;;  %s253_s9 = scalar_lea.vmem (!%p2437_p13), [#allocation2], %s1592_s30 }
  0x5e   : > { %1972 = dma.done.wait (%p2438_p1), %s250_s7, 64  }
  0x5f   : > { %1974 = vsyncadd (%p2438_p1), %s250_s7, 4294967232  ;;  %p2439_p8 = scmp.eq.s32.totalorder %s2075_s22, 0 }
  0x61   : > { %1976 = dma.done.wait (%p2439_p8), [#allocation6], 512   ;;  %p2440_p10 = pmov %p2439_p8 }
  0x62   : > { %p2441_p11 = pmov %p2439_p8 }
  0x63   : > { %1978 = vsyncadd (%p2440_p10), [#allocation6], 4294966784 }
  0x64   : > { %1980 = dma.done.wait (%p2441_p11), [#allocation9], 512   ;;  %p2442_p2 = pmov %p2439_p8 }
  0x65   : > { %v2011_v0 = vmov 0.0   ;;  %vm2012_vm0 = vmmov 0   ;;  %v1803_v1 = vld [vmem:[#allocation5 + $0x8] sm:$0xff]   ;;  %v1804_v2 = vld [vmem:[#allocation5] sm:$0xff]   ;;  %v299_v3 = vld [vmem:[%s253_s9] sm:$0xf]  ;;  %v375_v13 = vlaneseq }
  0x66   : > { %1982 = vsyncadd (%p2442_p2), [#allocation9], 4294966784  ;;  %1646 = vmatprep.subr.bf16.mxu0 %v2011_v0  ;;  %1650 = vmatprep.mubr.msk.bf16.mxu0 %vm2012_vm0, %v2011_v0  ;;  %vm316_vm1 = vcmask 261120   ;;  %s2013_s24 = smov 104   ;;  %s2014_s26 = smov 120   ;;  %vm818_vm2 = vcmask 64512  }
  0x67   : > { %1654 = vmatprep.subr.bf16.mxu1 %v2011_v0  ;;  %1656 = vmatprep.mubr.msk.bf16.mxu1 %vm2012_vm0, %v2011_v0  ;;  %s2015_s15 = smov 96   ;;  %s2016_s17 = smov 112   ;;  %v2017_v11 = vmov 1983009808   ;;  %v376_v15 = vshrl.u32 %v375_v13, 7  ;;  %vm1065_vm3 = vcmask 1043456  }
  0x68   : > { %1647 = vmatpush3.bf16.msra.mxu0 %v1803_v1  ;;  %v373_v12 = vunpack.c.l.s4 %v2017_v11  ;;  %v2018_v16 = vmov 1934713408   ;;  %p295_p4 = scmp.lt.s32.totalorder %s2075_s22, 1  ;;  %s2019_s13 = smov 64   ;;  %vm1396_vm4 = vcmask 130048   ;;  %vm1398_vm5 = vcmask 195584  }
  0x69   : > { %1648 = vmatprep.subr.bf16.mxu0 %v2011_v0  ;;  %v405_v17 = vunpack.c.l.s4 %v2018_v16  ;;  %s2020_s29 = smov 16   ;;  %s2021_s14 = smov 8  }
  0x6a   : > { %v374_v14 = vunpack.c.0.s8 %v373_v12  ;;  %s296_s23 = scalar_select %p295_p4, %s2075_s22, 1 }
  0x6b   : > { %v406_v23 = vunpack.c.0.s8 %v405_v17  ;;  %s2022_s16 = smov 24   ;;  %s1596_s30 = sshll.u32 %s2180_s28, 3 }
  0x6c   : > { %1649 = vmatpush3.bf16.msra.mxu0 %v1804_v2  ;;  %v2226_v20 = vsub.s32 %v374_v14, %v376_v15  ;;  %s297_s8 = scalar_lea.vmem %s2424_s4, %s296_s23  ;;  %s1621_s7 = sshll.u32 %s2075_s22, 7 }
  0x6d   : > { %1660 = vmatprep.subr.bf16.mxu0 %v2011_v0  ;;  %v2236_v30 = vsub.s32 %v406_v23, %v376_v15  ;;  %s294_s9 = scalar_lea.vmem [#allocation10], %s1596_s30  ;;  %s1462_s23 = scalar_lea.sflag [#allocation4], %s2180_s28 }
  0x6e   : > { %p2443_p12 = scmp.ne.s32.totalorder %s2435_s11, 0  ;;  %s2023_s22 = smov [#allocation10]  }
  0x6f   : > { %1651 = vmatmul.mubr.msk.bf16.vlgmr.msra.gmra.mxu0 %vm316_vm1, %v299_v3  ;;  %s1933_s12 = sshll.u32 %s2023_s22, 4  ;;  %s1934_s12 = int_to_ptr.vmem [resolvable:$false] %s1933_s12 }
  0x70   : > { %1662 = vmatprep.mubr.msk.bf16.mxu0 %vm2012_vm0, %v2011_v0 }
 0x12f   : > { %v2207_v4 = vpop.f32.mrf.mxu0 }
 0x130   : > { %367 = vrot.lane.b32.xlu1 %v2207_v4, %s2013_s24  ;;  %361 = vrot.lane.b32.xlu0 %v2207_v4, %s2014_s26  ;;  %s1475_s24 = sshll.u32 %s294_s9, 4  ;;  %s2378_s24 = int_to_ptr.vmem [resolvable:$true] %s1475_s24 }
 0x131   : > { %v1652_v5 = vpop.f32.mrf.mxu0  ;;  %s1929_s27 = scalar_lea.vmem %s2378_s24, 128  ;;  %p1936_p3 = scmp.lt.s32.totalorder %s2378_s24, %s1934_s12 }
 0x132   : > { %p1930_p6 = scmp.ne.s32.totalorder %s2378_s24, %s1929_s27 }
 0x133   : > { %v357_v6 = vpop.f32.mrf.mxu0 }
 0x134   : > { %510 = vrot.lane.b32.xlu1 %v2207_v4, %s2015_s15  ;;  %364 = vrot.lane.b32.xlu0 %v2207_v4, %s2016_s17  ;;  %s2376_s17 = scalar_lea.hbm %s2425_s5, %s1621_s7  ;;  %p1931_p0 = pnand %p1930_p6, %p2443_p12 }
 0x135   : > { %v1653_v7 = vpop.f32.mrf.mxu0 }
 0x136   : > { %p1932_p5 = pneg %p1931_p0 }
 0x1a2   : > { %v2213_v8 = vpop.permute.xlu0 %361  ;;  %v2216_v9 = vpop.permute.xlu1 %367 }
 0x1a3   : > { %512 = vrot.lane.b32.xlu0 %v2213_v8, %s2015_s15  ;;  %v386_v21 = vcombine.low %v2213_v8, %v2216_v9  ;;  %v387_v22 = vcombine.high %v2213_v8, %v2216_v9 }
 0x1a5   : > { %v394_v26 = vrot.slane %v386_v21, %v2226_v20  ;;  %v401_v27 = vrot.slane %v387_v22, %v2226_v20 }
 0x1a6   : > { %v2218_v10 = vpop.permute.xlu0 %364  ;;  %v511_v28 = vpop.permute.xlu1 %510 }
 0x1a7   : > { %516 = vrot.lane.b32.xlu0 %v2216_v9, %s2015_s15  ;;  %514 = vrot.lane.b32.xlu1 %v2218_v10, %s2015_s15  ;;  %v370_v18 = vcombine.low %v2207_v4, %v2218_v10  ;;  %v371_v19 = vcombine.high %v2207_v4, %v2218_v10 }
 0x1a9   : > { %v378_v24 = vrot.slane %v370_v18, %v2226_v20  ;;  %v385_v25 = vrot.slane %v371_v19, %v2226_v20 }
 0x1ab   : > { %v402_v31 = vcombine.low %v378_v24, %v394_v26  ;;  %v403_v32 = vcombine.high %v378_v24, %v394_v26  ;;  %v418_v33 = vcombine.low %v385_v25, %v401_v27  ;;  %v419_v34 = vcombine.high %v385_v25, %v401_v27 }
 0x1ad   : > { %v410_v41 = vrot.slane %v402_v31, %v2236_v30  ;;  %v417_v42 = vrot.slane %v403_v32, %v2236_v30  ;;  %v426_v43 = vrot.slane %v418_v33, %v2236_v30  ;;  %v433_v44 = vrot.slane %v419_v34, %v2236_v30 }
 0x1af   : > { %v438_v53 = vcombine.low %v410_v41, %v417_v42  ;;  %v1600_v54 = vcombine.high %v410_v41, %v417_v42  ;;  %v454_v55 = vcombine.low %v426_v43, %v433_v44  ;;  %v1601_v56 = vcombine.high %v426_v43, %v433_v44 }
 0x1b1   : > { %v445_v2 = vrot.slane %v438_v53, %v2226_v20  ;;  %v453_v3 = vrot.slane %v1600_v54, %v2226_v20  ;;  %v461_v5 = vrot.slane %v454_v55, %v2226_v20  ;;  %v469_v6 = vrot.slane %v1601_v56, %v2226_v20  ;;  %v815_v53 = vld [vmem:[#allocation8 + $0x8] sm:$0xff]  ;;  %v1610_v56 = vld [vmem:[%s297_s8] ss:$0 sm:$0xff]  ;;  %s1935_s8 = scalar_lea.vmem %s1934_s12, 256 }
 0x1b2   : > { %p1937_p7 = scmp.lt.s32.totalorder %s1935_s8, %s1929_s27 }
 0x1b3   : > { %v470_v21 = vcombine.low %v445_v2, %v453_v3  ;;  %v486_v22 = vcombine.low %v461_v5, %v469_v6 }
 0x1b4   : > { %p1938_p9 = por %p1937_p7, %p1936_p3 }
 0x1b5   : > { %v494_v31 = vrot.slane %v486_v22, %v2236_v30 }
 0x1b6   : > { %p1939_p13 = pnand %p1938_p9, %p1932_p5 }
 0x215   : > { %v513_v29 = vpop.permute.xlu0 %512 }
 0x219   : > { %v515_v35 = vpop.permute.xlu1 %514  ;;  %v517_v36 = vpop.permute.xlu0 %516 }
 0x21a   : > { %v522_v37 = vcombine.low %v511_v28, %v515_v35  ;;  %v523_v38 = vcombine.high %v511_v28, %v515_v35  ;;  %v538_v39 = vcombine.low %v513_v29, %v517_v36  ;;  %v539_v40 = vcombine.high %v513_v29, %v517_v36 }
 0x21b   : > { %v478_v29 = vrot.slane %v470_v21, %v2236_v30  ;;  %v471_v36 = vcombine.high %v445_v2, %v453_v3 }
 0x21c   : > { %v530_v45 = vrot.slane %v522_v37, %v2226_v20  ;;  %v537_v46 = vrot.slane %v523_v38, %v2226_v20  ;;  %v546_v47 = vrot.slane %v538_v39, %v2226_v20  ;;  %v553_v48 = vrot.slane %v539_v40, %v2226_v20 }
 0x21d   : > { %v487_v37 = vcombine.high %v461_v5, %v469_v6  ;;  %v502_v38 = vcombine.low %v478_v29, %v494_v31  ;;  %v503_v39 = vcombine.high %v478_v29, %v494_v31  ;;  %v485_v44 = vrot.slane %v471_v36, %v2236_v30 }
 0x21e   : > { %v554_v49 = vcombine.low %v530_v45, %v546_v47  ;;  %v555_v50 = vcombine.high %v530_v45, %v546_v47  ;;  %v570_v51 = vcombine.low %v537_v46, %v553_v48  ;;  %v571_v52 = vcombine.high %v537_v46, %v553_v48 }
 0x21f   : > { %v506_v42 = vpack.c.bf16 %v502_v38, %v502_v38  ;;  %v507_v43 = vpack.c.bf16 %v503_v39, %v503_v39  ;;  %v501_v45 = vrot.slane %v487_v37, %v2236_v30 }
 0x220   : > { %v562_v57 = vrot.slane %v554_v49, %v2236_v30  ;;  %v569_v58 = vrot.slane %v555_v50, %v2236_v30  ;;  %v578_v59 = vrot.slane %v570_v51, %v2236_v30  ;;  %v585_v60 = vrot.slane %v571_v52, %v2236_v30  ;;  %v814_v52 = vld [vmem:[#allocation8] sm:$0xff] }
 0x221   : > { %v504_v48 = vcombine.low %v485_v44, %v501_v45  ;;  %v505_v49 = vcombine.high %v485_v44, %v501_v45 }
 0x222   : > { %v590_v61 = vcombine.low %v562_v57, %v569_v58  ;;  %v1602_v62 = vcombine.high %v562_v57, %v569_v58  ;;  %v606_v63 = vcombine.low %v578_v59, %v585_v60  ;;  %v1603_v1 = vcombine.high %v578_v59, %v585_v60 }
 0x223   : > { %v508_v50 = vpack.c.bf16 %v504_v48, %v504_v48  ;;  %v509_v51 = vpack.c.bf16 %v505_v49, %v505_v49 }
 0x224   : > { %v597_v7 = vrot.slane %v590_v61, %v2226_v20  ;;  %v605_v11 = vrot.slane %v1602_v62, %v2226_v20  ;;  %v613_v12 = vrot.slane %v606_v63, %v2226_v20  ;;  %v621_v13 = vrot.slane %v1603_v1, %v2226_v20 }
 0x226   : > { %v622_v14 = vcombine.low %v597_v7, %v605_v11  ;;  %v638_v15 = vcombine.low %v613_v12, %v621_v13  ;;  %v623_v16 = vcombine.high %v597_v7, %v605_v11  ;;  %v639_v17 = vcombine.high %v613_v12, %v621_v13  ;;  %v816_v7 = vld [vmem:[#allocation8 + $0x10] sm:$0xff]  ;;  %v817_v11 = vld [vmem:[#allocation8 + $0x18] sm:$0xff] }
 0x228   : > { %v630_v18 = vrot.slane %v622_v14, %v2236_v30  ;;  %v646_v19 = vrot.slane %v638_v15, %v2236_v30  ;;  %v637_v25 = vrot.slane %v623_v16, %v2236_v30  ;;  %v653_v26 = vrot.slane %v639_v17, %v2236_v30 }
 0x22a   : > { %v654_v23 = vcombine.low %v630_v18, %v646_v19  ;;  %v655_v24 = vcombine.high %v630_v18, %v646_v19  ;;  %v656_v34 = vcombine.low %v637_v25, %v653_v26  ;;  %v657_v35 = vcombine.high %v637_v25, %v653_v26 }
 0x22c   : > { %v658_v27 = vpack.c.bf16 %v654_v23, %v654_v23  ;;  %v659_v28 = vpack.c.bf16 %v655_v24, %v655_v24  ;;  %v660_v40 = vpack.c.bf16 %v656_v34, %v656_v34  ;;  %v661_v41 = vpack.c.bf16 %v657_v35, %v657_v35 }
 0x22e   : > { %v823_v32 = vsel %vm818_vm2, %v658_v27, 0  ;;  %v869_v33 = vsel %vm818_vm2, %v659_v28, 0  ;;  %v915_v46 = vsel %vm818_vm2, %v660_v40, 0  ;;  %v961_v47 = vsel %vm818_vm2, %v661_v41, 0 }
 0x22f   : > { %1655 = vmatpush3.bf16.xpose.msra.mxu1 %v823_v32  ;;  %1661 = vmatpush3.bf16.xpose.msra.mxu0 %v869_v33 }
 0x230   : > { %1666 = vmatprep.subr.bf16.mxu1 %v2011_v0  ;;  %1672 = vmatprep.subr.bf16.mxu0 %v2011_v0 }
 0x236   : > { %1657 = vmatmul.mubr.msk.bf16.vlgmr.msra.gmra.mxu1 %vm818_vm2, %v506_v42  ;;  %1663 = vmatmul.mubr.msk.bf16.vlgmr.msra.gmra.mxu0 %vm818_vm2, %v507_v43 }
 0x237   : > { %1667 = vmatpush3.bf16.xpose.msra.mxu1 %v915_v46  ;;  %1673 = vmatpush3.bf16.xpose.msra.mxu0 %v961_v47 }
 0x238   : > { %1668 = vmatprep.mubr.msk.bf16.mxu1 %vm2012_vm0, %v2011_v0  ;;  %1674 = vmatprep.mubr.msk.bf16.mxu0 %vm2012_vm0, %v2011_v0 }
 0x239   : > { %1678 = vmatprep.subr.bf16.mxu1 %v2011_v0  ;;  %1684 = vmatprep.subr.bf16.mxu0 %v2011_v0 }
 0x23e   : > { %1669 = vmatmul.mubr.msk.bf16.vlgmr.msra.gmra.mxu1 %vm818_vm2, %v508_v50  ;;  %1675 = vmatmul.mubr.msk.bf16.vlgmr.msra.gmra.mxu0 %vm818_vm2, %v509_v51 }
 0x23f   : > { %1680 = vmatprep.mubr.msk.bf16.mxu1 %vm2012_vm0, %v2011_v0  ;;  %1686 = vmatprep.mubr.msk.bf16.mxu0 %vm2012_vm0, %v2011_v0 }
 0x2f6   : > { %v859_v54 = vpop.f32.mrf.mxu1  ;;  %v905_v55 = vpop.f32.mrf.mxu0 }
 0x2f7   : > { %v860_v57 = vadd.f32 %v859_v54, %v814_v52  ;;  %v906_v58 = vadd.f32 %v905_v55, %v815_v53 }
 0x2f8   : > { %v1658_v59 = vpop.f32.mrf.mxu1  ;;  %v1664_v60 = vpop.f32.mrf.mxu0 }
 0x2f9   : > { %v1010_v61 = vadd.f32 %v1610_v56, %v860_v57  ;;  %v1011_v62 = vadd.f32 %v1610_v56, %v906_v58 }
 0x2fa   : > { %v862_v63 = vpop.f32.mrf.mxu1  ;;  %v908_v1 = vpop.f32.mrf.mxu0 }
 0x2fb   : > { %v1014_v2 = vsel %vm818_vm2, %v1010_v61, -inf  ;;  %v1017_v3 = vsel %vm818_vm2, %v1011_v62, -inf }
 0x2fc   : > { %1015 = vmax.xlane.f32.xlu1 %v1014_v2  ;;  %v1659_v5 = vpop.f32.mrf.mxu1  ;;  %1018 = vmax.xlane.f32.xlu0 %v1017_v3  ;;  %v1665_v6 = vpop.f32.mrf.mxu0 }
 0x2fe   : > { %v951_v12 = vpop.f32.mrf.mxu1  ;;  %v997_v13 = vpop.f32.mrf.mxu0 }
 0x2ff   : > { %v952_v14 = vadd.f32 %v951_v12, %v816_v7  ;;  %v998_v15 = vadd.f32 %v997_v13, %v817_v11 }
 0x300   : > { %v1670_v16 = vpop.f32.mrf.mxu1  ;;  %v1676_v17 = vpop.f32.mrf.mxu0 }
 0x301   : > { %v1012_v18 = vadd.f32 %v1610_v56, %v952_v14  ;;  %v1013_v19 = vadd.f32 %v1610_v56, %v998_v15 }
 0x302   : > { %v954_v21 = vpop.f32.mrf.mxu1  ;;  %v1000_v22 = vpop.f32.mrf.mxu0 }
 0x303   : > { %v1020_v23 = vsel %vm818_vm2, %v1012_v18, -inf  ;;  %v1023_v24 = vsel %vm818_vm2, %v1013_v19, -inf }
 0x304   : > { %v1671_v25 = vpop.f32.mrf.mxu1  ;;  %1021 = vmax.xlane.f32.xlu0 %v1020_v23  ;;  %1024 = vmax.xlane.f32.xlu1 %v1023_v24  ;;  %v1677_v26 = vpop.f32.mrf.mxu0 }
 0x315   : > { %664 = vrot.lane.b32.xlu1 %v2213_v8, %s2019_s13 }
 0x31a   : > { %662 = vrot.lane.b32.xlu0 %v2207_v4, %s2019_s13 }
 0x385   : > { %v1016_v27 = vpop.xlane.xlu1 %1015  ;;  %v1019_v28 = vpop.xlane.xlu0 %1018 }
 0x386   : > { %v1026_v29 = vsub.f32 %v1010_v61, %v1016_v27  ;;  %v1027_v31 = vsub.f32 %v1011_v62, %v1019_v28 }
 0x388   : > { %v1030_v32 = vmul.f32 1.442695, %v1026_v29  ;;  %v1032_v33 = vmul.f32 1.442695, %v1027_v31 }
 0x38a   : > { %1807 = vpow2.f32 %v1030_v32 }
 0x38b   : > { %1809 = vpow2.f32 %v1032_v33 }
 0x38d   : > { %v1025_v4 = vpop.xlane.xlu1 %1024  ;;  %v1022_v37 = vpop.xlane.xlu0 %1021 }
 0x38e   : > { %v1029_v38 = vsub.f32 %v1013_v19, %v1025_v4  ;;  %v1028_v39 = vsub.f32 %v1012_v18, %v1022_v37 }
 0x390   : > { %v1036_v40 = vmul.f32 1.442695, %v1029_v38  ;;  %v1034_v41 = vmul.f32 1.442695, %v1028_v39 }
 0x391   : > { %v665_v45 = vpop.permute.xlu1 %664 }
 0x392   : > { %1811 = vpow2.f32 %v1036_v40 }
 0x393   : > { %1813 = vpow2.f32 %v1034_v41 }
 0x397   : > { %v2297_v34 = vpop.eup %1807 }
 0x398   : > { %v2299_v35 = vpop.eup %1809  ;;  %v1038_v36 = vsel %vm818_vm2, %v2297_v34, 0.0 }
 0x399   : > { %1039 = vadd.xlane.f32.xlu0 %v1038_v36  ;;  %v1041_v8 = vsel %vm818_vm2, %v2299_v35, 0.0 }
 0x39a   : > { %1042 = vadd.xlane.f32.xlu1 %v1041_v8 }
 0x39f   : > { %v2307_v42 = vpop.eup %1811 }
 0x3a0   : > { %v2309_v43 = vpop.eup %1813  ;;  %v1047_v44 = vsel %vm818_vm2, %v2307_v42, 0.0 }
 0x3ab   : > { %666 = vrot.lane.b32.xlu1 %v2218_v10, %s2019_s13  ;;  %v1044_v10 = vsel %vm818_vm2, %v2309_v43, 0.0 }
 0x3af   : > { %668 = vrot.lane.b32.xlu0 %v2216_v9, %s2019_s13  ;;  %v663_v9 = vpop.permute.xlu0 %662 }
 0x3ce   : > { %1048 = vadd.xlane.f32.xlu0 %v1047_v44 }
 0x3cf   : > { %1045 = vadd.xlane.f32.xlu1 %v1044_v10 }
 0x422   : > { %v1040_v46 = vpop.xlane.xlu0 %1039 }
 0x423   : > { %v1043_v47 = vpop.xlane.xlu1 %1042  ;;  %1815 = vrcp.f32 %v1040_v46 }
 0x424   : > { %1817 = vrcp.f32 %v1043_v47 }
 0x426   : > { %v669_v48 = vpop.permute.xlu0 %668 }
 0x427   : > { %v690_v49 = vcombine.low %v665_v45, %v669_v48  ;;  %v691_v50 = vcombine.high %v665_v45, %v669_v48  ;;  %v667_v51 = vpop.permute.xlu1 %666 }
 0x428   : > { %v674_v52 = vcombine.low %v663_v9, %v667_v51  ;;  %v675_v53 = vcombine.high %v663_v9, %v667_v51 }
 0x429   : > { %v698_v54 = vrot.slane %v690_v49, %v2226_v20  ;;  %v705_v55 = vrot.slane %v691_v50, %v2226_v20 }
 0x42a   : > { %v682_v56 = vrot.slane %v674_v52, %v2226_v20  ;;  %v689_v57 = vrot.slane %v675_v53, %v2226_v20 }
 0x42c   : > { %v706_v58 = vcombine.low %v682_v56, %v698_v54  ;;  %v707_v59 = vcombine.high %v682_v56, %v698_v54  ;;  %v722_v60 = vcombine.low %v689_v57, %v705_v55  ;;  %v723_v61 = vcombine.high %v689_v57, %v705_v55 }
 0x42e   : > { %v714_v62 = vrot.slane %v706_v58, %v2236_v30  ;;  %v721_v63 = vrot.slane %v707_v59, %v2236_v30  ;;  %v730_v1 = vrot.slane %v722_v60, %v2236_v30  ;;  %v737_v2 = vrot.slane %v723_v61, %v2236_v30 }
 0x430   : > { %v742_v3 = vcombine.low %v714_v62, %v721_v63  ;;  %v1604_v5 = vcombine.high %v714_v62, %v721_v63  ;;  %v758_v6 = vcombine.low %v730_v1, %v737_v2  ;;  %v1605_v7 = vcombine.high %v730_v1, %v737_v2  ;;  %v1816_v19 = vpop.eup %1815 }
 0x431   : > { %v1818_v25 = vpop.eup %1817  ;;  %v1054_v33 = vmul.f32 %v1816_v19, %v2297_v34 }
 0x432   : > { %v749_v11 = vrot.slane %v742_v3, %v2226_v20  ;;  %v757_v12 = vrot.slane %v1604_v5, %v2226_v20  ;;  %v765_v13 = vrot.slane %v758_v6, %v2226_v20  ;;  %v773_v14 = vrot.slane %v1605_v7, %v2226_v20 }
 0x433   : > { %v1055_v36 = vmul.f32 %v1818_v25, %v2299_v35  ;;  %v1058_v39 = vpack.c.bf16 %v1054_v33, %v1054_v33 }
 0x434   : > { %v774_v15 = vcombine.low %v749_v11, %v757_v12  ;;  %v790_v16 = vcombine.low %v765_v13, %v773_v14  ;;  %v775_v17 = vcombine.high %v749_v11, %v757_v12  ;;  %v791_v18 = vcombine.high %v765_v13, %v773_v14 }
 0x435   : > { %v1059_v40 = vpack.c.bf16 %v1055_v36, %v1055_v36 }
 0x436   : > { %v782_v21 = vrot.slane %v774_v15, %v2236_v30  ;;  %v798_v22 = vrot.slane %v790_v16, %v2236_v30  ;;  %v789_v23 = vrot.slane %v775_v17, %v2236_v30  ;;  %v805_v24 = vrot.slane %v791_v18, %v2236_v30  ;;  %v1805_v15 = vld [vmem:[#allocation7 + $0x8] sm:$0xff]  }
 0x438   : > { %v806_v26 = vcombine.low %v782_v21, %v798_v22  ;;  %v807_v27 = vcombine.high %v782_v21, %v798_v22  ;;  %v808_v28 = vcombine.low %v789_v23, %v805_v24  ;;  %v809_v29 = vcombine.high %v789_v23, %v805_v24 }
 0x43a   : > { %v810_v31 = vpack.c.bf16 %v806_v26, %v806_v26  ;;  %v811_v32 = vpack.c.bf16 %v807_v27, %v807_v27  ;;  %v812_v37 = vpack.c.bf16 %v808_v28, %v808_v28  ;;  %v813_v38 = vpack.c.bf16 %v809_v29, %v809_v29  ;;  %v1806_v26 = vld [vmem:[#allocation7] sm:$0xff]  }
 0x43c   : > { %v1067_v8 = vsel %vm1065_vm3, %v810_v31, 0  ;;  %v1113_v4 = vsel %vm1065_vm3, %v811_v32, 0  ;;  %v1159_v34 = vsel %vm1065_vm3, %v812_v37, 0  ;;  %v1205_v35 = vsel %vm1065_vm3, %v813_v38, 0 }
 0x43d   : > { %1679 = vmatpush3.bf16.msra.mxu1 %v1067_v8  ;;  %1685 = vmatpush3.bf16.msra.mxu0 %v1113_v4 }
 0x43e   : > { %1690 = vmatprep.subr.bf16.mxu1 %v2011_v0  ;;  %1696 = vmatprep.subr.bf16.mxu0 %v2011_v0 }
 0x440   : > { %1681 = vmatmul.mubr.msk.bf16.vlgmr.msra.gmra.mxu1 %vm818_vm2, %v1058_v39  ;;  %1687 = vmatmul.mubr.msk.bf16.vlgmr.msra.gmra.mxu0 %vm818_vm2, %v1059_v40 }
 0x441   : > { %1691 = vmatpush3.bf16.msra.mxu1 %v1159_v34  ;;  %1697 = vmatpush3.bf16.msra.mxu0 %v1205_v35 }
 0x442   : > { %1692 = vmatprep.mubr.msk.bf16.mxu1 %vm2012_vm0, %v2011_v0  ;;  %1698 = vmatprep.mubr.msk.bf16.mxu0 %vm2012_vm0, %v2011_v0 }
 0x443   : > { %1702 = vmatprep.subr.bf16.mxu1 %v2011_v0 }
 0x457   : > { %v1049_v41 = vpop.xlane.xlu0 %1048 }
 0x458   : > { %1819 = vrcp.f32 %v1049_v41  ;;  %v1046_v44 = vpop.xlane.xlu1 %1045 }
 0x459   : > { %1821 = vrcp.f32 %v1046_v44 }
 0x465   : > { %v1820_v10 = vpop.eup %1819 }
 0x466   : > { %v1822_v9 = vpop.eup %1821  ;;  %v1057_v45 = vmul.f32 %v1820_v10, %v2307_v42 }
 0x467   : > { %v1056_v46 = vmul.f32 %v1822_v9, %v2309_v43 }
 0x468   : > { %v1061_v47 = vpack.c.bf16 %v1057_v45, %v1057_v45 }
 0x469   : > { %v1060_v48 = vpack.c.bf16 %v1056_v46, %v1056_v46 }
 0x46a   : > { %1699 = vmatmul.mubr.msk.bf16.vlgmr.msra.gmra.mxu0 %vm818_vm2, %v1061_v47 }
 0x46b   : > { %1693 = vmatmul.mubr.msk.bf16.vlgmr.msra.gmra.mxu1 %vm818_vm2, %v1060_v48 }
 0x46c   : > { %1706 = vmatprep.mubr.msk.bf16.mxu1 %vm2012_vm0, %v2011_v0  ;;  %1703 = vmatpush3.bf16.msra.mxu1 %v1805_v15 }
 0x46d   : > { %1704 = vmatprep.subr.bf16.mxu1 %v2011_v0 }
 0x470   : > { %1705 = vmatpush3.bf16.msra.mxu1 %v1806_v26 }
 0x500   : > { %v1103_v49 = vpop.f32.mrf.mxu1  ;;  %v1149_v50 = vpop.f32.mrf.mxu0 }
 0x502   : > { %v1682_v51 = vpop.f32.mrf.mxu1  ;;  %v1688_v52 = vpop.f32.mrf.mxu0 }
 0x504   : > { %v1106_v53 = vpop.f32.mrf.mxu1  ;;  %v1152_v54 = vpop.f32.mrf.mxu0 }
 0x506   : > { %v1683_v55 = vpop.f32.mrf.mxu1  ;;  %v1689_v56 = vpop.f32.mrf.mxu0 }
 0x52a   : > { %v1241_v42 = vpop.f32.mrf.mxu0 }
 0x52b   : > { %v1195_v57 = vpop.f32.mrf.mxu1  ;;  %v1263_v43 = vcombine.low %v1149_v50, %v1241_v42  ;;  %v1264_v58 = vcombine.high %v1149_v50, %v1241_v42 }
 0x52c   : > { %v1247_v59 = vcombine.low %v1103_v49, %v1195_v57  ;;  %v1248_v60 = vcombine.high %v1103_v49, %v1195_v57  ;;  %v1700_v61 = vpop.f32.mrf.mxu0 }
 0x52d   : > { %v1271_v62 = vrot.slane %v1263_v43, %v2226_v20  ;;  %v1278_v63 = vrot.slane %v1264_v58, %v2226_v20  ;;  %v1694_v1 = vpop.f32.mrf.mxu1 }
 0x52e   : > { %v1255_v2 = vrot.slane %v1247_v59, %v2226_v20  ;;  %v1262_v3 = vrot.slane %v1248_v60, %v2226_v20  ;;  %v1244_v5 = vpop.f32.mrf.mxu0 }
 0x52f   : > { %v1198_v6 = vpop.f32.mrf.mxu1 }
 0x530   : > { %v1279_v7 = vcombine.low %v1255_v2, %v1271_v62  ;;  %v1280_v11 = vcombine.high %v1255_v2, %v1271_v62  ;;  %v1295_v12 = vcombine.low %v1262_v3, %v1278_v63  ;;  %v1296_v13 = vcombine.high %v1262_v3, %v1278_v63  ;;  %v1701_v14 = vpop.f32.mrf.mxu0 }
 0x531   : > { %v1695_v16 = vpop.f32.mrf.mxu1 }
 0x532   : > { %v1287_v17 = vrot.slane %v1279_v7, %v2236_v30  ;;  %v1294_v18 = vrot.slane %v1280_v11, %v2236_v30  ;;  %v1303_v19 = vrot.slane %v1295_v12, %v2236_v30  ;;  %v1310_v21 = vrot.slane %v1296_v13, %v2236_v30 }
 0x534   : > { %v1315_v22 = vcombine.low %v1287_v17, %v1294_v18  ;;  %v1615_v23 = vcombine.high %v1287_v17, %v1294_v18  ;;  %v1331_v24 = vcombine.low %v1303_v19, %v1310_v21  ;;  %v1616_v25 = vcombine.high %v1303_v19, %v1310_v21 }
 0x536   : > { %v1322_v27 = vrot.slane %v1315_v22, %v2226_v20  ;;  %v1330_v28 = vrot.slane %v1615_v23, %v2226_v20  ;;  %v1338_v29 = vrot.slane %v1331_v24, %v2226_v20  ;;  %v1346_v31 = vrot.slane %v1616_v25, %v2226_v20 }
 0x538   : > { %v1348_v32 = vcombine.high %v1322_v27, %v1330_v28  ;;  %v1364_v33 = vcombine.high %v1338_v29, %v1346_v31  ;;  %v1347_v36 = vcombine.low %v1322_v27, %v1330_v28  ;;  %v1363_v8 = vcombine.low %v1338_v29, %v1346_v31 }
 0x53a   : > { %v1362_v0 = vrot.slane %v1348_v32, %v2236_v30  ;;  %v1378_v4 = vrot.slane %v1364_v33, %v2236_v30  ;;  %v1355_v37 = vrot.slane %v1347_v36, %v2236_v30  ;;  %v1371_v38 = vrot.slane %v1363_v8, %v2236_v30 }
 0x53c   : > { %v1381_v39 = vcombine.low %v1362_v0, %v1378_v4  ;;  %v1380_v40 = vcombine.high %v1355_v37, %v1371_v38  ;;  %v1379_v34 = vcombine.low %v1355_v37, %v1371_v38  ;;  %v1382_v20 = vcombine.high %v1362_v0, %v1378_v4 }
 0x53e   : > { %1388 = vrot.lane.b32.xlu1 %v1381_v39, %s2020_s29  ;;  %1384 = vrot.lane.b32.xlu0 %v1380_v40, %s2021_s14 }
 0x542   : > { %1392 = vrot.lane.b32.xlu1 %v1382_v20, %s2022_s16 }
 0x5b0   : > { %v1389_v35 = vpop.permute.xlu1 %1388  ;;  %v1385_v41 = vpop.permute.xlu0 %1384 }
 0x5b1   : > { %v1395_v44 = vsel %vm818_vm2, %v1379_v34, %v1385_v41 }
 0x5b2   : > { %v1397_v10 = vsel %vm1396_vm4, %v1395_v44, %v1389_v35 }
 0x5b4   : > { %v1393_v30 = vpop.permute.xlu1 %1392 }
 0x5b5   : > { %v1399_v9 = vsel %vm1398_vm5, %v1397_v10, %v1393_v30 }
 0x5b6   : > { %v1400_v45 = vpack.c.bf16 %v1399_v9, %v1399_v9 }
 0x5b8   : > { %1707 = vmatmul.mubr.msk.bf16.vlgmr.msra.gmra.mxu1 %vm316_vm1, %v1400_v45 }
 0x678   : > { %v1454_v46 = vpop.f32.mrf.mxu1 }
 0x679   : > { %1460 = vst.msk [vmem:[%s294_s9] sm:$0xff] %vm316_vm1, %v1454_v46 }
 0x67a   : > { %v1708_v47 = vpop.f32.mrf.mxu1 }
 0x67b   : > { %1942 = shalt.err (!%p1939_p13)
}
 0x67c   : > { %s1943_s13 = scalar_lea.hbm %s2376_s17, 128  ;;  %s1947_s14 = scalar_lea.hbm %s2425_s5, 256 }
 0x67d   : > { %p1944_p1 = scmp.ne.s32.totalorder %s2376_s17, %s1943_s13  ;;  %p1948_p11 = scmp.lt.s32.totalorder %s2376_s17, %s2425_s5 }
 0x67e   : > { %p1949_p2 = scmp.lt.s32.totalorder %s1947_s14, %s1943_s13 }
 0x67f   : > { %p1945_p8 = pnand %p1944_p1, %p2443_p12 }
 0x680   : > { %p1950_p4 = por %p1949_p2, %p1948_p11 }
 0x681   : > { %p1946_p10 = pneg %p1945_p8 }
 0x683   : > { %p1951_p6 = pnand %p1950_p4, %p1946_p10 }
 0x685   : > { %1954 = shalt.err (!%p1951_p6)
}
 0x686   : > { %1724 = dma.vmem_to_hbm [thread:$0]  (%p2443_p12), %s2378_s24, 128, %s2376_s17, %s1462_s23   ;;  %v1457_v48 = vpop.f32.mrf.mxu1 }
 0x688   : > { %v1709_v49 = vpop.f32.mrf.mxu1 }
 0x689 PF: > { %s1487_s7 = sand.u32 1, %s1989_s18   ;;  %p2444_p0 = scmp.ne.s32.totalorder %s2431_s25, 0 }
 0x68a   : > { %p2445_p5 = scmp.ge.s32.totalorder %s2001_s21, 2  ;;  %s1488_s9 = scalar_lea.sflag [#allocation4], %s1487_s7 }
 0x68c   : > { %p1741_p3 = pnand %p2445_p5, %p2444_p0 }
 0x68e   : > { %p1742_p7 = pneg %p1741_p3 }
 0x690   : > { %1984 = dma.done.wait (%p1742_p7), %s1488_s9, 128  }
 0x691   : > { %1986 = vsyncadd (%p1742_p7), %s1488_s9, 4294967168  ;;  %p20_p12 = scmp.ge.s32.totalorder %s2134_s6, 4   ;;  %s2446_s18 = smov %s1993_s19 }
 0x692   : > { %s2447_s19 = smov %s1997_s20  ;;  %s2448_s20 = smov %s2144_s10 }
 0x693   : > { %s2449_s21 = smov %s2134_s6  ;;  %22 = sbr.rel (!%p20_p12) target bundleno = 7 (0x7), region = 100 }
 0x698   :  { %1493 = vsyncpa [#allocation3], 1 }
 0x699   :  { %1495 = vsyncpa [#allocation3 + $0x1], 1 }
 0x69a   :  { %1496 = vsyncpa [#allocation6], 1 }
 0x69b   :  { %1497 = vsyncpa [#allocation9], 1 }
 0x69c   :  { %1498 = vsyncpa [#allocation4], 1 }
 0x69d   :  { %1500 = vsyncpa [#allocation4 + $0x1], 1 }

</bundles_post_ra>
